<compile_context>
chip_gen: v7x
topology: tpu7x:2x2x1
jax: 0.10.0
libtpu: 0.0.40
codegen_flags: <defaults>
</compile_context>

<pallas_src>
import math

import jax
import jax.numpy as jnp
from jax.experimental import pallas as pl
from jax.experimental.pallas import tpu as pltpu


# ----------------------------- helpers -------------------------------------

def _full_block(shape):
    """BlockSpec covering the whole array for a grid=(1,) call."""
    nd = len(shape)
    return pl.BlockSpec(shape, lambda i, _nd=nd: (0,) * _nd)


# ------------------- fused conv1d + BN (+residual) (+ReLU) ------------------

def _make_conv_bn_kernel(B, taps, C_in, L_out, relu, with_residual, eps=1e-5):
    """Conv (in-kernel im2col, bf16 MXU) + training-mode BN + opt residual/ReLU."""
    K = len(taps)

    def kernel(*refs):
        if with_residual:
            x_ref, w_ref, g_ref, b_ref, res_ref, o_ref = refs
        else:
            x_ref, w_ref, g_ref, b_ref, o_ref = refs
        C_out = o_ref.shape[-1]
        x = x_ref[...]                          # (B, rows, C_fold)  f32
        w = w_ref[...]                          # (K, C_in, C_out)   bf16

        accs = []
        s1 = jnp.zeros((1, C_out), jnp.float32)
        s2 = jnp.zeros((1, C_out), jnp.float32)
        for b in range(B):                      # B is small & static
            acc = jnp.zeros((L_out, C_out), jnp.float32)
            for k in range(K):                  # accumulating tap matmuls
                ro, co = taps[k]
                tap = x[b, ro:ro + L_out, co:co + C_in].astype(jnp.bfloat16)
                acc = acc + jnp.dot(tap, w[k],
                                    preferred_element_type=jnp.float32)
            accs.append(acc)
            s1 = s1 + jnp.sum(acc, axis=0, keepdims=True)
            s2 = s2 + jnp.sum(acc * acc, axis=0, keepdims=True)

        inv_n = 1.0 / float(B * L_out)
        mean = s1 * inv_n
        var = jnp.maximum(s2 * inv_n - mean * mean, 0.0)
        scale = jax.lax.rsqrt(var + eps) * g_ref[...]
        shift = b_ref[...] - mean * scale

        for b in range(B):
            y = accs[b] * scale + shift
            if with_residual:
                y = y + res_ref[b]
            if relu:
                y = jnp.maximum(y, 0.0)
            o_ref[b] = y

    return kernel


def conv_bn_act(x, w_kco, gamma, beta, *, stride, padding, relu, residual=None):
    """x: (B, L, C_in) f32 channels-last.  w_kco: (K, C_in, C_out) bf16."""
    B, L, C_in = x.shape
    K, _, C_out = w_kco.shape
    if padding > 0:
        x = jnp.pad(x, ((0, 0), (padding, padding), (0, 0)))
    L_pad = L + 2 * padding
    L_out = (L_pad - K) // stride + 1

    if stride == 1:
        x_in = x
        taps = tuple((k, 0) for k in range(K))
    else:
        # Fold the stride into the channel dim so all in-kernel slices are
        # contiguous: element (b, l, c) -> (b, l // s, (l % s) * C_in + c).
        rem = L_pad % stride
        if rem:
            x = jnp.pad(x, ((0, 0), (0, stride - rem), (0, 0)))
            L_pad += stride - rem
        x_in = x.reshape(B, L_pad // stride, stride * C_in)
        taps = tuple((k // stride, (k % stride) * C_in) for k in range(K))

    kernel = _make_conv_bn_kernel(B, taps, C_in, L_out, relu,
                                  residual is not None)
    inputs = [x_in, w_kco,
              gamma.reshape(1, C_out).astype(jnp.float32),
              beta.reshape(1, C_out).astype(jnp.float32)]
    if residual is not None:
        inputs.append(residual)

    return pl.pallas_call(
        kernel,
        grid=(1,),
        in_specs=[_full_block(a.shape) for a in inputs],
        out_specs=_full_block((B, L_out, C_out)),
        out_shape=jax.ShapeDtypeStruct((B, L_out, C_out), jnp.float32),
        compiler_params=pltpu.CompilerParams(dimension_semantics=("arbitrary",)),
    )(*inputs)


# ------------------------------- maxpool ------------------------------------

def _make_maxpool_kernel(taps, C, L_out):
    def kernel(x_ref, o_ref):
        x = x_ref[...]
        ro0, co0 = taps[0]
        m = x[:, ro0:ro0 + L_out, co0:co0 + C]
        for ro, co in taps[1:]:
            m = jnp.maximum(m, x[:, ro:ro + L_out, co:co + C])
        o_ref[...] = m
    return kernel


def maxpool1d_k3_s2_p1(x):
    B, L, C = x.shape
    xp = jnp.pad(x, ((0, 0), (1, 1), (0, 0)), constant_values=-jnp.inf)
    L_pad = L + 2
    L_out = (L_pad - 3) // 2 + 1
    if L_pad % 2:
        xp = jnp.pad(xp, ((0, 0), (0, 1), (0, 0)), constant_values=-jnp.inf)
        L_pad += 1
    x2 = xp.reshape(B, L_pad // 2, 2 * C)          # fold stride into channels
    taps = ((0, 0), (0, C), (1, 0))
    kernel = _make_maxpool_kernel(taps, C, L_out)
    return pl.pallas_call(
        kernel,
        grid=(1,),
        in_specs=[_full_block(x2.shape)],
        out_specs=_full_block((B, L_out, C)),
        out_shape=jax.ShapeDtypeStruct((B, L_out, C), jnp.float32),
        compiler_params=pltpu.CompilerParams(dimension_semantics=("arbitrary",)),
    )(x2)


# ------------------------------ BasicBlock ----------------------------------

def basic_block(x, p):
    s = p["stride"]
    if "down_w" in p:
        identity = conv_bn_act(x, p["down_w"], p["down_g"], p["down_b"],
                               stride=s, padding=0, relu=False)
    else:
        identity = x
    out = conv_bn_act(x, p["conv1_w"], p["bn1_g"], p["bn1_b"],
                      stride=s, padding=1, relu=True)
    out = conv_bn_act(out, p["conv2_w"], p["bn2_g"], p["bn2_b"],
                      stride=1, padding=1, relu=True, residual=identity)
    return out


# --------------------- LSTM (single kernel over time grid) ------------------

def _make_lstm_kernel(H, with_fc):
    def kernel(*refs):
        if with_fc:
            (x_ref, wih_ref, whh_ref, bias_ref, fcw_ref, fcb_ref,
             seq_ref, logit_ref, h_sc, c_sc) = refs
        else:
            x_ref, wih_ref, whh_ref, bias_ref, seq_ref, h_sc, c_sc = refs

        t = pl.program_id(0)

        @pl.when(t == 0)
        def _init():
            h_sc[...] = jnp.zeros_like(h_sc)
            c_sc[...] = jnp.zeros_like(c_sc)

        x_t = x_ref[0].astype(jnp.bfloat16)                  # (B, In)
        gates = (jnp.dot(x_t, wih_ref[...],
                         preferred_element_type=jnp.float32)
                 + jnp.dot(h_sc[...].astype(jnp.bfloat16), whh_ref[...],
                           preferred_element_type=jnp.float32)
                 + bias_ref[...])                            # (B, 4H) f32

        # gates are pre-ordered (i, f, o, g): one sigmoid on 3H, one tanh on H
        sig = jax.nn.sigmoid(gates[:, :3 * H])
        g_t = jnp.tanh(gates[:, 3 * H:])
        i_t = sig[:, 0 * H:1 * H]
        f_t = sig[:, 1 * H:2 * H]
        o_t = sig[:, 2 * H:3 * H]

        c_new = f_t * c_sc[...] + i_t * g_t
        h_new = o_t * jnp.tanh(c_new)
        c_sc[...] = c_new
        h_sc[...] = h_new
        seq_ref[0] = h_new

        if with_fc:
            @pl.when(t == pl.num_programs(0) - 1)
            def _final():
                logit_ref[...] = (jnp.dot(h_new.astype(jnp.bfloat16),
                                          fcw_ref[...],
                                          preferred_element_type=jnp.float32)
                                  + fcb_ref[...])
    return kernel


def lstm_fc_forward(x_tbi, lstm_params, fc_w_t, fc_b):
    """x_tbi: (T, B, In).  Returns logits (B, num_classes)."""
    T, B, _ = x_tbi.shape
    n_layers = len(lstm_params)
    layer_in = x_tbi
    logits = None
    for li, lp in enumerate(lstm_params):
        In = layer_in.shape[2]
        H = lp["whh_t"].shape[0]
        with_fc = (li == n_layers - 1)
        kernel = _make_lstm_kernel(H, with_fc)

        inputs = [layer_in, lp["wih_t"], lp["whh_t"], lp["bias"]]
        in_specs = [
            pl.BlockSpec((1, B, In), lambda t: (t, 0, 0)),      # x_t per step
            pl.BlockSpec((In, 4 * H), lambda t: (0, 0)),        # resident
            pl.BlockSpec((H, 4 * H), lambda t: (0, 0)),         # resident
            pl.BlockSpec((1, 4 * H), lambda t: (0, 0)),         # resident
        ]
        if with_fc:
            NC = fc_w_t.shape[1]
            inputs += [fc_w_t, fc_b]
            in_specs += [pl.BlockSpec((H, NC), lambda t: (0, 0)),
                         pl.BlockSpec((1, NC), lambda t: (0, 0))]
            out_shape = (jax.ShapeDtypeStruct((T, B, H), jnp.float32),
                         jax.ShapeDtypeStruct((B, NC), jnp.float32))
            out_specs = (pl.BlockSpec((1, B, H), lambda t: (t, 0, 0)),
                         pl.BlockSpec((B, NC), lambda t: (0, 0)))
        else:
            out_shape = jax.ShapeDtypeStruct((T, B, H), jnp.float32)
            out_specs = pl.BlockSpec((1, B, H), lambda t: (t, 0, 0))

        result = pl.pallas_call(
            kernel,
            grid=(T,),                           # recurrent -> sequential axis
            in_specs=in_specs,
            out_specs=out_specs,
            out_shape=out_shape,
            scratch_shapes=[pltpu.VMEM((B, H), jnp.float32),   # h state
                            pltpu.VMEM((B, H), jnp.float32)],  # c state
            compiler_params=pltpu.CompilerParams(
                dimension_semantics=("arbitrary",)),
        )(*inputs)

        if with_fc:
            layer_in, logits = result
        else:
            layer_in = result
    return logits


# -------------------------------- forward -----------------------------------

def forward(params, x_ncl):
    # x_ncl: (B, feature_channel, L)  -- PyTorch NCL layout
    x = jnp.transpose(x_ncl, (0, 2, 1))            # channels-last (B, L, C)
    x = conv_bn_act(x, params["conv1_w"], params["conv1_g"], params["conv1_b"],
                    stride=2, padding=0, relu=True)
    x = maxpool1d_k3_s2_p1(x)
    for layer_name in ("layer1", "layer2", "layer3"):
        for blk in params[layer_name]:
            x = basic_block(x, blk)
    # x: (B, T, 256)  ==  torch.transpose(x, 2, 1);  LSTM kernel wants (T, B, C)
    x_tbc = jnp.transpose(x, (1, 0, 2))
    return lstm_fc_forward(x_tbc, params["lstm"], params["fc_w_t"],
                           params["fc_b"])


# --------------------- parameter creation & preparation ---------------------

def make_params(key, feature_channel, blocks_num, hidden_size, num_layers,
                num_classes):
    """Deterministic params in PyTorch layout (f32)."""
    keys = iter(jax.random.split(key, 512))
    nk = lambda: next(keys)

    def conv_w(out_c, in_c, k):
        scale = 1.0 / math.sqrt(in_c * k)
        return scale * jax.random.normal(nk(), (out_c, in_c, k), jnp.float32)

    def bn_p(c):
        g = 1.0 + 0.1 * jax.random.normal(nk(), (c,), jnp.float32)
        b = 0.1 * jax.random.normal(nk(), (c,), jnp.float32)
        return g, b

    params = {}
    in_ch = 64
    params["conv1_w"] = conv_w(64, feature_channel, 2)
    params["bn1_g"], params["bn1_b"] = bn_p(64)

    def make_layer(in_ch, channel, n_blocks, stride):
        blocks = []
        for b in range(n_blocks):
            s = stride if b == 0 else 1
            p = {"stride": s, "conv1_w": conv_w(channel, in_ch, 3)}
            p["bn1_g"], p["bn1_b"] = bn_p(channel)
            p["conv2_w"] = conv_w(channel, channel, 3)
            p["bn2_g"], p["bn2_b"] = bn_p(channel)
            if b == 0 and (stride != 1 or in_ch != channel):
                p["down_w"] = conv_w(channel, in_ch, 1)
                p["down_g"], p["down_b"] = bn_p(channel)
            blocks.append(p)
            in_ch = channel
        return blocks, in_ch

    params["layer1"], in_ch = make_layer(in_ch, 64, blocks_num[0], 1)
    params["layer2"], in_ch = make_layer(in_ch, 128, blocks_num[1], 2)
    params["layer3"], in_ch = make_layer(in_ch, 256, blocks_num[2], 2)

    lstm_layers = []
    inp = 256
    s = 1.0 / math.sqrt(hidden_size)
    for _ in range(num_layers):
        lstm_layers.append({
            "w_ih": s * jax.random.normal(nk(), (4 * hidden_size, inp), jnp.float32),
            "w_hh": s * jax.random.normal(nk(), (4 * hidden_size, hidden_size), jnp.float32),
            "b_ih": s * jax.random.normal(nk(), (4 * hidden_size,), jnp.float32),
            "b_hh": s * jax.random.normal(nk(), (4 * hidden_size,), jnp.float32),
        })
        inp = hidden_size
    params["lstm"] = lstm_layers

    params["fc_w"] = s * jax.random.normal(nk(), (num_classes, hidden_size), jnp.float32)
    params["fc_b"] = 0.1 * jax.random.normal(nk(), (num_classes,), jnp.float32)
    return params


def prepare_params(raw):
    """Convert torch-layout params to kernel-ready layout (bf16 MXU operands)."""
    def conv_prep(w):                       # (C_out, C_in, K) -> (K, C_in, C_out)
        return jnp.transpose(w, (2, 1, 0)).astype(jnp.bfloat16)

    def reorder_gates(m, H):                # PyTorch (i, f, g, o) -> (i, f, o, g)
        return jnp.concatenate([m[:2 * H], m[3 * H:4 * H], m[2 * H:3 * H]], axis=0)

    p = {"conv1_w": conv_prep(raw["conv1_w"]),
         "conv1_g": raw["bn1_g"], "conv1_b": raw["bn1_b"]}
    for name in ("layer1", "layer2", "layer3"):
        blocks = []
        for b in raw[name]:
            nb = {"stride": b["stride"],
                  "conv1_w": conv_prep(b["conv1_w"]),
                  "bn1_g": b["bn1_g"], "bn1_b": b["bn1_b"],
                  "conv2_w": conv_prep(b["conv2_w"]),
                  "bn2_g": b["bn2_g"], "bn2_b": b["bn2_b"]}
            if "down_w" in b:
                nb["down_w"] = conv_prep(b["down_w"])
                nb["down_g"], nb["down_b"] = b["down_g"], b["down_b"]
            blocks.append(nb)
        p[name] = blocks

    lstm = []
    for lp in raw["lstm"]:
        H = lp["w_hh"].shape[1]
        wih = reorder_gates(lp["w_ih"], H)
        whh = reorder_gates(lp["w_hh"], H)
        bias = reorder_gates(lp["b_ih"] + lp["b_hh"], H)
        lstm.append({"wih_t": wih.T.astype(jnp.bfloat16),      # (In, 4H)
                     "whh_t": whh.T.astype(jnp.bfloat16),      # (H, 4H)
                     "bias": bias.reshape(1, 4 * H).astype(jnp.float32)})
    p["lstm"] = lstm

    p["fc_w_t"] = raw["fc_w"].T.astype(jnp.bfloat16)           # (H, num_classes)
    p["fc_b"] = raw["fc_b"].reshape(1, -1).astype(jnp.float32)
    return p


# ---------------------------------- main ------------------------------------

if __name__ == "__main__":
    key = jax.random.PRNGKey(0)
    kp, kx = jax.random.split(key)

    B, feature_channel, L = 2, 4, 64
    hidden_size, num_layers, num_classes = 32, 2, 5
    blocks_num = [1, 1, 1]

    raw_params = make_params(kp, feature_channel, blocks_num, hidden_size,
                             num_layers, num_classes)
    params = prepare_params(raw_params)
    x = jax.random.normal(kx, (B, feature_channel, L), jnp.float32)

    out = forward(params, x)
    out = jax.block_until_ready(out)
    assert out.shape == (B, num_classes), out.shape
    assert bool(jnp.all(jnp.isfinite(out)))
    print("KERNEL_OK")
</pallas_src>

<mosaic_0001>
module attributes {stable_mosaic.version = 11 : i64} {
  func.func @kernel(%arg0: i32, %arg1: memref<2x32x8xf32, #tpu.memory_space<vmem>>, %arg2: memref<2x4x64xbf16, #tpu.memory_space<vmem>>, %arg3: memref<1x64xf32, #tpu.memory_space<vmem>>, %arg4: memref<1x64xf32, #tpu.memory_space<vmem>>, %arg5: memref<2x32x64xf32, #tpu.memory_space<vmem>>) attributes {dimension_semantics = [#tpu.dimension_semantics<arbitrary>], iteration_bounds = array<i64: 1>, scalar_prefetch = 0 : i64, scratch_operands = 0 : i64, tpu.core_type = #tpu.core_type<tc>, window_params = [{pipeline_mode = #tpu.pipeline_mode<synchronous>, transform_indices = @transform_0, window_bounds = array<i64: 2, 32, 8>}, {pipeline_mode = #tpu.pipeline_mode<synchronous>, transform_indices = @transform_1, window_bounds = array<i64: 2, 4, 64>}, {pipeline_mode = #tpu.pipeline_mode<synchronous>, transform_indices = @transform_2, window_bounds = array<i64: 1, 64>}, {pipeline_mode = #tpu.pipeline_mode<synchronous>, transform_indices = @transform_3, window_bounds = array<i64: 1, 64>}, {pipeline_mode = #tpu.pipeline_mode<synchronous>, transform_indices = @transform_4, window_bounds = array<i64: 2, 32, 64>}]} {
    %c0 = arith.constant 0 : index
    %c0_0 = arith.constant 0 : index
    %c0_1 = arith.constant 0 : index
    %0 = vector.load %arg1[%c0, %c0_0, %c0_1] : memref<2x32x8xf32, #tpu.memory_space<vmem>>, vector<2x32x8xf32>
    %c0_2 = arith.constant 0 : index
    %c0_3 = arith.constant 0 : index
    %c0_4 = arith.constant 0 : index
    %1 = vector.load %arg2[%c0_2, %c0_3, %c0_4] : memref<2x4x64xbf16, #tpu.memory_space<vmem>>, vector<2x4x64xbf16>
    %cst = arith.constant 0.000000e+00 : f32
    %2 = vector.broadcast %cst : f32 to vector<1x64xf32>
    %cst_5 = arith.constant 0.000000e+00 : f32
    %3 = vector.broadcast %cst_5 : f32 to vector<1x64xf32>
    %cst_6 = arith.constant 0.000000e+00 : f32
    %4 = vector.broadcast %cst_6 : f32 to vector<32x64xf32>
    %5 = vector.extract_strided_slice %0 {offsets = [0, 0, 0], sizes = [1, 32, 4], strides = [1, 1, 1]} : vector<2x32x8xf32> to vector<1x32x4xf32>
    %6 = vector.shape_cast %5 : vector<1x32x4xf32> to vector<32x4xf32>
    %7 = arith.truncf %6 : vector<32x4xf32> to vector<32x4xbf16>
    %8 = vector.extract_strided_slice %1 {offsets = [0, 0, 0], sizes = [1, 4, 64], strides = [1, 1, 1]} : vector<2x4x64xbf16> to vector<1x4x64xbf16>
    %9 = vector.shape_cast %8 : vector<1x4x64xbf16> to vector<4x64xbf16>
    %cst_7 = arith.constant dense<0.000000e+00> : vector<32x64xf32>
    %10 = tpu.matmul %7, %9, %cst_7 {dimension_numbers = #tpu.dot_dimension_numbers<[1], [0], [0], [1], [0, 0, 1, 1], [], []>} : vector<32x4xbf16>, vector<4x64xbf16>, vector<32x64xf32> -> vector<32x64xf32>
    %11 = arith.addf %4, %10 : vector<32x64xf32>
    %12 = vector.extract_strided_slice %0 {offsets = [0, 0, 4], sizes = [1, 32, 4], strides = [1, 1, 1]} : vector<2x32x8xf32> to vector<1x32x4xf32>
    %13 = vector.shape_cast %12 : vector<1x32x4xf32> to vector<32x4xf32>
    %14 = arith.truncf %13 : vector<32x4xf32> to vector<32x4xbf16>
    %15 = vector.extract_strided_slice %1 {offsets = [1, 0, 0], sizes = [1, 4, 64], strides = [1, 1, 1]} : vector<2x4x64xbf16> to vector<1x4x64xbf16>
    %16 = vector.shape_cast %15 : vector<1x4x64xbf16> to vector<4x64xbf16>
    %cst_8 = arith.constant dense<0.000000e+00> : vector<32x64xf32>
    %17 = tpu.matmul %14, %16, %cst_8 {dimension_numbers = #tpu.dot_dimension_numbers<[1], [0], [0], [1], [0, 0, 1, 1], [], []>} : vector<32x4xbf16>, vector<4x64xbf16>, vector<32x64xf32> -> vector<32x64xf32>
    %18 = arith.addf %11, %17 : vector<32x64xf32>
    %cst_9 = arith.constant dense<0.000000e+00> : vector<64xf32>
    %19 = vector.multi_reduction <add>, %18, %cst_9 [0] : vector<32x64xf32> to vector<64xf32>
    %20 = vector.shape_cast %19 : vector<64xf32> to vector<1x64xf32>
    %21 = arith.addf %2, %20 : vector<1x64xf32>
    %22 = arith.mulf %18, %18 : vector<32x64xf32>
    %cst_10 = arith.constant dense<0.000000e+00> : vector<64xf32>
    %23 = vector.multi_reduction <add>, %22, %cst_10 [0] : vector<32x64xf32> to vector<64xf32>
    %24 = vector.shape_cast %23 : vector<64xf32> to vector<1x64xf32>
    %25 = arith.addf %3, %24 : vector<1x64xf32>
    %cst_11 = arith.constant 0.000000e+00 : f32
    %26 = vector.broadcast %cst_11 : f32 to vector<32x64xf32>
    %27 = vector.extract_strided_slice %0 {offsets = [1, 0, 0], sizes = [1, 32, 4], strides = [1, 1, 1]} : vector<2x32x8xf32> to vector<1x32x4xf32>
    %28 = vector.shape_cast %27 : vector<1x32x4xf32> to vector<32x4xf32>
    %29 = arith.truncf %28 : vector<32x4xf32> to vector<32x4xbf16>
    %30 = vector.extract_strided_slice %1 {offsets = [0, 0, 0], sizes = [1, 4, 64], strides = [1, 1, 1]} : vector<2x4x64xbf16> to vector<1x4x64xbf16>
    %31 = vector.shape_cast %30 : vector<1x4x64xbf16> to vector<4x64xbf16>
    %cst_12 = arith.constant dense<0.000000e+00> : vector<32x64xf32>
    %32 = tpu.matmul %29, %31, %cst_12 {dimension_numbers = #tpu.dot_dimension_numbers<[1], [0], [0], [1], [0, 0, 1, 1], [], []>} : vector<32x4xbf16>, vector<4x64xbf16>, vector<32x64xf32> -> vector<32x64xf32>
    %33 = arith.addf %26, %32 : vector<32x64xf32>
    %34 = vector.extract_strided_slice %0 {offsets = [1, 0, 4], sizes = [1, 32, 4], strides = [1, 1, 1]} : vector<2x32x8xf32> to vector<1x32x4xf32>
    %35 = vector.shape_cast %34 : vector<1x32x4xf32> to vector<32x4xf32>
    %36 = arith.truncf %35 : vector<32x4xf32> to vector<32x4xbf16>
    %37 = vector.extract_strided_slice %1 {offsets = [1, 0, 0], sizes = [1, 4, 64], strides = [1, 1, 1]} : vector<2x4x64xbf16> to vector<1x4x64xbf16>
    %38 = vector.shape_cast %37 : vector<1x4x64xbf16> to vector<4x64xbf16>
    %cst_13 = arith.constant dense<0.000000e+00> : vector<32x64xf32>
    %39 = tpu.matmul %36, %38, %cst_13 {dimension_numbers = #tpu.dot_dimension_numbers<[1], [0], [0], [1], [0, 0, 1, 1], [], []>} : vector<32x4xbf16>, vector<4x64xbf16>, vector<32x64xf32> -> vector<32x64xf32>
    %40 = arith.addf %33, %39 : vector<32x64xf32>
    %cst_14 = arith.constant dense<0.000000e+00> : vector<64xf32>
    %41 = vector.multi_reduction <add>, %40, %cst_14 [0] : vector<32x64xf32> to vector<64xf32>
    %42 = vector.shape_cast %41 : vector<64xf32> to vector<1x64xf32>
    %43 = arith.addf %21, %42 : vector<1x64xf32>
    %44 = arith.mulf %40, %40 : vector<32x64xf32>
    %cst_15 = arith.constant dense<0.000000e+00> : vector<64xf32>
    %45 = vector.multi_reduction <add>, %44, %cst_15 [0] : vector<32x64xf32> to vector<64xf32>
    %46 = vector.shape_cast %45 : vector<64xf32> to vector<1x64xf32>
    %47 = arith.addf %25, %46 : vector<1x64xf32>
    %cst_16 = arith.constant 1.562500e-02 : f32
    %48 = vector.broadcast %cst_16 : f32 to vector<1x64xf32>
    %49 = arith.mulf %43, %48 : vector<1x64xf32>
    %cst_17 = arith.constant 1.562500e-02 : f32
    %50 = vector.broadcast %cst_17 : f32 to vector<1x64xf32>
    %51 = arith.mulf %47, %50 : vector<1x64xf32>
    %52 = arith.mulf %49, %49 : vector<1x64xf32>
    %53 = arith.subf %51, %52 : vector<1x64xf32>
    %cst_18 = arith.constant 0.000000e+00 : f32
    %54 = vector.broadcast %cst_18 : f32 to vector<1x64xf32>
    %55 = arith.maximumf %53, %54 : vector<1x64xf32>
    %cst_19 = arith.constant 9.99999974E-6 : f32
    %56 = vector.broadcast %cst_19 : f32 to vector<1x64xf32>
    %57 = arith.addf %55, %56 : vector<1x64xf32>
    %58 = math.rsqrt %57 : vector<1x64xf32>
    %c0_20 = arith.constant 0 : index
    %c0_21 = arith.constant 0 : index
    %59 = vector.load %arg3[%c0_20, %c0_21] : memref<1x64xf32, #tpu.memory_space<vmem>>, vector<1x64xf32>
    %60 = arith.mulf %58, %59 : vector<1x64xf32>
    %c0_22 = arith.constant 0 : index
    %c0_23 = arith.constant 0 : index
    %61 = vector.load %arg4[%c0_22, %c0_23] : memref<1x64xf32, #tpu.memory_space<vmem>>, vector<1x64xf32>
    %62 = arith.mulf %49, %60 : vector<1x64xf32>
    %63 = arith.subf %61, %62 : vector<1x64xf32>
    %64 = vector.broadcast %60 : vector<1x64xf32> to vector<32x64xf32>
    %65 = arith.mulf %18, %64 : vector<32x64xf32>
    %66 = vector.broadcast %63 : vector<1x64xf32> to vector<32x64xf32>
    %67 = arith.addf %65, %66 : vector<32x64xf32>
    %cst_24 = arith.constant 0.000000e+00 : f32
    %68 = vector.broadcast %cst_24 : f32 to vector<32x64xf32>
    %69 = arith.maximumf %67, %68 : vector<32x64xf32>
    %c0_25 = arith.constant 0 : index
    %c0_26 = arith.constant 0 : index
    %c0_27 = arith.constant 0 : index
    %70 = vector.load %arg5[%c0_25, %c0_26, %c0_27] : memref<2x32x64xf32, #tpu.memory_space<vmem>>, vector<1x32x64xf32>
    %71 = vector.shape_cast %70 : vector<1x32x64xf32> to vector<32x64xf32>
    %72 = vector.shape_cast %69 : vector<32x64xf32> to vector<1x32x64xf32>
    tpu.vector_store %arg5[%c0_25, %c0_26, %c0_27], %72 {strides = array<i32>} : memref<2x32x64xf32, #tpu.memory_space<vmem>>, vector<1x32x64xf32>,
    %73 = vector.broadcast %60 : vector<1x64xf32> to vector<32x64xf32>
    %74 = arith.mulf %40, %73 : vector<32x64xf32>
    %75 = vector.broadcast %63 : vector<1x64xf32> to vector<32x64xf32>
    %76 = arith.addf %74, %75 : vector<32x64xf32>
    %cst_28 = arith.constant 0.000000e+00 : f32
    %77 = vector.broadcast %cst_28 : f32 to vector<32x64xf32>
    %78 = arith.maximumf %76, %77 : vector<32x64xf32>
    %c1 = arith.constant 1 : index
    %c0_29 = arith.constant 0 : index
    %c0_30 = arith.constant 0 : index
    %79 = vector.load %arg5[%c1, %c0_29, %c0_30] : memref<2x32x64xf32, #tpu.memory_space<vmem>>, vector<1x32x64xf32>
    %80 = vector.shape_cast %79 : vector<1x32x64xf32> to vector<32x64xf32>
    %81 = vector.shape_cast %78 : vector<32x64xf32> to vector<1x32x64xf32>
    tpu.vector_store %arg5[%c1, %c0_29, %c0_30], %81 {strides = array<i32>} : memref<2x32x64xf32, #tpu.memory_space<vmem>>, vector<1x32x64xf32>,
    return
  }
  func.func @transform_0(%arg0: i32) -> (i32, i32, i32) {
    %c0_i32 = arith.constant 0 : i32
    %c0_i32_0 = arith.constant 0 : i32
    %c0_i32_1 = arith.constant 0 : i32
    %c0_i32_2 = arith.constant 0 : i32
    return %c0_i32, %c0_i32_0, %c0_i32_1 : i32, i32, i32
  }
  func.func @transform_1(%arg0: i32) -> (i32, i32, i32) {
    %c0_i32 = arith.constant 0 : i32
    %c0_i32_0 = arith.constant 0 : i32
    %c0_i32_1 = arith.constant 0 : i32
    %c0_i32_2 = arith.constant 0 : i32
    return %c0_i32, %c0_i32_0, %c0_i32_1 : i32, i32, i32
  }
  func.func @transform_2(%arg0: i32) -> (i32, i32) {
    %c0_i32 = arith.constant 0 : i32
    %c0_i32_0 = arith.constant 0 : i32
    %c0_i32_1 = arith.constant 0 : i32
    return %c0_i32, %c0_i32_0 : i32, i32
  }
  func.func @transform_3(%arg0: i32) -> (i32, i32) {
    %c0_i32 = arith.constant 0 : i32
    %c0_i32_0 = arith.constant 0 : i32
    %c0_i32_1 = arith.constant 0 : i32
    return %c0_i32, %c0_i32_0 : i32, i32
  }
  func.func @transform_4(%arg0: i32) -> (i32, i32, i32) {
    %c0_i32 = arith.constant 0 : i32
    %c0_i32_0 = arith.constant 0 : i32
    %c0_i32_1 = arith.constant 0 : i32
    %c0_i32_2 = arith.constant 0 : i32
    return %c0_i32, %c0_i32_0, %c0_i32_1 : i32, i32, i32
  }
}

</mosaic_0001>

<bundles_post_ra>
// kernel: tpu_custom_call.1
= control target key start
LH: loop header
LB: loop body
LE: loop exit
PB: predicated region body
PF: predicated region fallthrough
CT: control target
= control target key end

     0   :  { %vm44_vm0 = vcmask 1041408   ;;  %s495_s7 = smov 124   ;;  %s650_s0 = inlined_call_operand.vmem [shape: f32[2,32,8], index: 0, kind: input, shape index: {}]   ;;  %s651_s1 = inlined_call_operand.vmem [shape: bf16[2,4,64], index: 1, kind: input, shape index: {}]   ;;  %s652_s2 = inlined_call_operand.vmem [shape: f32[1,64], index: 2, kind: input, shape index: {}]   ;;  %s653_s3 = inlined_call_operand.vmem [shape: f32[1,64], index: 3, kind: input, shape index: {}]   ;;  %s654_s4 = inlined_call_operand.hbm [shape: f32[2,32,64], index: 4, kind: output, shape index: {}]  }
   0x1   :  { %v19_v0 = vld [vmem:[%s650_s0] sm:$0xff]  ;;  %v20_v1 = vld [vmem:[%s650_s0 + $0x8] sm:$0xff]  ;;  %v21_v2 = vld [vmem:[%s650_s0 + $0x10] sm:$0xff] }
   0x2   :  { %v29_v3 = vpack.c.bf16 %v20_v1, %v19_v0  ;;  %v22_v4 = vld [vmem:[%s650_s0 + $0x18] sm:$0xff]  ;;  %v23_v5 = vld [vmem:[%s650_s0 + $0x20] sm:$0xff]  ;;  %v24_v6 = vld [vmem:[%s650_s0 + $0x28] sm:$0xff] }
   0x3   :  { %v30_v7 = vpack.c.bf16 %v22_v4, %v21_v2  ;;  %v25_v8 = vld [vmem:[%s650_s0 + $0x30] sm:$0xff]  ;;  %v26_v9 = vld [vmem:[%s650_s0 + $0x38] sm:$0xff]  ;;  %v28_v10 = vld [vmem:[%s651_s1 + $0x2] sm:$0x3]  ;;  %v188_v11 = vpack.c.bf16 %v24_v6, %v23_v5 }
   0x4   :  { %33 = vrot.lane.b32.xlu0 %v29_v3, %s495_s7  ;;  %461 = vmatprep.subr.msk.bf16.mxu0 %vm44_vm0, %v28_v10  ;;  %v46_v12 = vsel %vm44_vm0, %v28_v10, 0  ;;  %v27_v13 = vld [vmem:[%s651_s1] sm:$0x3] }
   0x5   :  { %9 = vsyncpa [#allocation3], 0  ;;  %35 = vrot.lane.b32.xlu1 %v30_v7, %s495_s7  ;;  %v189_v14 = vpack.c.bf16 %v26_v9, %v25_v8  ;;  %430 = vmatpush3.bf16.msra.mxu0 %v46_v12  ;;  %v104_v15 = vsel %vm44_vm0, %v27_v13, 0  ;;  %vm37_vm1 = vcmask 31744   ;;  %vm155_vm2 = vcmask 523264  }
   0x6   :  { %463 = vmatprep.subr.msk.bf16.mxu1 %vm44_vm0, %v28_v10  ;;  %462 = vmatprep.subr.msk.bf16.mxu0 %vm44_vm0, %v27_v13 }
   0x7   :  { %442 = vmatpush3.bf16.msra.mxu1 %v46_v12 }
   0x8   :  { %192 = vrot.lane.b32.xlu0 %v188_v11, %s495_s7  ;;  %464 = vmatprep.subr.msk.bf16.mxu1 %vm44_vm0, %v27_v13 }
   0x9   :  { %194 = vrot.lane.b32.xlu1 %v189_v14, %s495_s7 }
  0x76   :  { %v34_v16 = vpop.permute.xlu0 %33 }
  0x77   :  { %v36_v17 = vpop.permute.xlu1 %35  ;;  %431 = vmatprep.mubr.msk.bf16.mxu0 %vm37_vm1, %v34_v16 }
  0x78   :  { %432 = vmatmul.mubr.msk.bf16.vlgmr.msra.gmra.mrb[0].mxu0 %vm37_vm1, %v36_v17 }
  0x79   :  { %436 = vmatpush3.bf16.msra.mxu0 %v104_v15  ;;  %437 = vmatprep.mubr.msk.bf16.mxu0 %vm37_vm1, %v29_v3 }
  0x7a   :  { %v193_v18 = vpop.permute.xlu0 %192 }
  0x7b   :  { %v195_v19 = vpop.permute.xlu1 %194  ;;  %443 = vmatprep.mubr.msk.bf16.mxu1 %vm37_vm1, %v193_v18 }
  0x7c   :  { %444 = vmatmul.mubr.msk.bf16.vlgmr.msra.gmra.mrb[0].mxu1 %vm37_vm1, %v195_v19 }
  0x7d   :  { %448 = vmatpush3.bf16.msra.mxu1 %v104_v15  ;;  %449 = vmatprep.mubr.msk.bf16.mxu1 %vm37_vm1, %v188_v11 }
  0x84   :  { %438 = vmatmul.mubr.msk.bf16.vlgmr.msra.gmra.mrb[0].mxu0 %vm37_vm1, %v30_v7 }
  0x88   :  { %450 = vmatmul.mubr.msk.bf16.vlgmr.msra.gmra.mrb[0].mxu1 %vm37_vm1, %v189_v14 }
 0x157   :  { %v560_v20 = vpop.f32.mrb[0].mxu0 }
 0x158   :  { %v562_v21 = vpop.f32.mrb[1].mxu0  ;;  %v172_v24 = vmul.f32 %v560_v20, %v560_v20  ;;  %v159_v33 = vsel %vm155_vm2, %v560_v20, 0.0 }
 0x159   :  { %v170_v22 = vmul.f32 %v562_v21, %v562_v21  ;;  %v566_v23 = vpop.f32.mrb[2].mxu0  ;;  %v156_v26 = vsel %vm155_vm2, %v562_v21, 0.0 }
 0x15a   :  { %v570_v25 = vpop.f32.mrb[3].mxu0  ;;  %v173_v30 = vmul.f32 %v566_v23, %v566_v23  ;;  %v177_v38 = vsel %vm155_vm2, %v172_v24, 0.0  ;;  %v161_v39 = vsel %vm155_vm2, %v566_v23, 0.0 }
 0x15b   :  { %v157_v27 = vsel %vm155_vm2, %v570_v25, 0.0  ;;  %v171_v28 = vmul.f32 %v570_v25, %v570_v25  ;;  %v578_v29 = vpop.f32.mrb[0].mxu1  ;;  %v174_v34 = vsel %vm155_vm2, %v170_v22, 0.0 }
 0x15c   :  { %v158_v31 = vadd.f32 %v157_v27, %v156_v26  ;;  %v582_v32 = vpop.f32.mrb[1].mxu1  ;;  %v322_v43 = vmul.f32 %v578_v29, %v578_v29  ;;  %v179_v47 = vsel %vm155_vm2, %v173_v30, 0.0  ;;  %v309_v51 = vsel %vm155_vm2, %v578_v29, 0.0 }
 0x15d   :  { %v175_v35 = vsel %vm155_vm2, %v171_v28, 0.0  ;;  %v320_v36 = vmul.f32 %v582_v32, %v582_v32  ;;  %v590_v37 = vpop.f32.mrb[2].mxu1  ;;  %v306_v44 = vsel %vm155_vm2, %v582_v32, 0.0 }
 0x15e   :  { %v160_v40 = vadd.f32 %v159_v33, %v158_v31  ;;  %v176_v41 = vadd.f32 %v175_v35, %v174_v34  ;;  %v595_v42 = vpop.f32.mrb[3].mxu1  ;;  %v323_v53 = vmul.f32 %v590_v37, %v590_v37  ;;  %v327_v59 = vsel %vm155_vm2, %v322_v43, 0.0 }
 0x15f   :  { %v307_v45 = vsel %vm155_vm2, %v595_v42, 0.0  ;;  %v321_v46 = vmul.f32 %v595_v42, %v595_v42  ;;  %v324_v52 = vsel %vm155_vm2, %v320_v36, 0.0  ;;  %v311_v60 = vsel %vm155_vm2, %v590_v37, 0.0 }
 0x160   :  { %v162_v48 = vadd.f32 %v161_v39, %v160_v40  ;;  %v178_v49 = vadd.f32 %v177_v38, %v176_v41  ;;  %v308_v50 = vadd.f32 %v307_v45, %v306_v44  ;;  %v329_v1 = vsel %vm155_vm2, %v323_v53, 0.0  ;;  %v345_v41 = vld [vmem:[%s652_s2] sm:$0x1]  ;;  %s496_s2 = smov [#allocation2]  }
 0x161   :  { %v325_v54 = vsel %vm155_vm2, %v321_v46, 0.0  ;;  %v350_v39 = vlaneseq  ;;  %v347_v46 = vld [vmem:[%s653_s3] sm:$0x1]  ;;  %s398_s3 = sshll.u32 %s496_s2, 4  ;;  %s399_s3 = int_to_ptr.vmem [resolvable:$true] %s398_s3 }
 0x162   :  { %v163_v55 = vrot.slane %v162_v48, 4  ;;  %v180_v56 = vadd.f32 %v179_v47, %v178_v49  ;;  %v310_v57 = vadd.f32 %v309_v51, %v308_v50  ;;  %v326_v58 = vadd.f32 %v325_v54, %v324_v52  ;;  %s471_s12 = scalar_lea.vmem %s399_s3, 1024  ;;  %p476_p1 = scmp.lt.s32.totalorder %s399_s3, %s399_s3 }
 0x163   :  { %v351_v40 = vshrl.u32 %v350_v39, 7  ;;  %p472_p0 = scmp.ne.s32.totalorder %s399_s3, %s471_s12  ;;  %p477_p2 = scmp.lt.s32.totalorder %s471_s12, %s471_s12 }
 0x164   :  { %v164_v61 = vadd.f32 %v163_v55, %v162_v48  ;;  %v181_v62 = vrot.slane %v180_v56, 4  ;;  %v312_v63 = vadd.f32 %v311_v60, %v310_v57  ;;  %v328_v0 = vadd.f32 %v327_v59, %v326_v58 }
 0x165   :  { %v352_v43 = vsub.s32 0, %v351_v40  ;;  %p478_p3 = por %p477_p2, %p476_p1 }
 0x166   :  { %v165_v2 = vrot.slane %v164_v61, 2  ;;  %v182_v3 = vadd.f32 %v181_v62, %v180_v56  ;;  %v313_v4 = vrot.slane %v312_v63, 4  ;;  %v330_v5 = vadd.f32 %v329_v1, %v328_v0 }
 0x167   :  { %p479_p4 = pnand %p478_p3, %p472_p0 }
 0x168   :  { %v166_v6 = vadd.f32 %v165_v2, %v164_v61  ;;  %v183_v7 = vrot.slane %v182_v3, 2  ;;  %v314_v8 = vadd.f32 %v313_v4, %v312_v63  ;;  %v331_v9 = vrot.slane %v330_v5, 4 }
 0x16a   :  { %v184_v10 = vadd.f32 %v183_v7, %v182_v3  ;;  %v315_v11 = vrot.slane %v314_v8, 2  ;;  %v332_v12 = vadd.f32 %v331_v9, %v330_v5  ;;  %v167_v13 = vrot.slane %v166_v6, 1 }
 0x16c   :  { %v316_v14 = vadd.f32 %v315_v11, %v314_v8  ;;  %v333_v15 = vrot.slane %v332_v12, 2  ;;  %v185_v16 = vrot.slane %v184_v10, 1  ;;  %v168_v19 = vadd.f32 %v167_v13, %v166_v6 }
 0x16e   :  { %v317_v17 = vrot.slane %v316_v14, 1  ;;  %v334_v18 = vadd.f32 %v333_v15, %v332_v12  ;;  %v186_v26 = vadd.f32 %v185_v16, %v184_v10 }
 0x170   :  { %v318_v22 = vadd.f32 %v317_v17, %v316_v14  ;;  %v335_v24 = vrot.slane %v334_v18, 1 }
 0x172   :  { %v319_v27 = vadd.f32 %v318_v22, %v168_v19  ;;  %v336_v28 = vadd.f32 %v335_v24, %v334_v18 }
 0x174   :  { %v337_v30 = vadd.f32 %v336_v28, %v186_v26  ;;  %v338_v31 = vmul.f32 0.015625, %v319_v27 }
 0x176   :  { %v339_v33 = vmul.f32 0.015625, %v337_v30  ;;  %v340_v34 = vmul.f32 %v338_v31, %v338_v31 }
 0x178   :  { %v341_v35 = vsub.f32 %v339_v33, %v340_v34 }
 0x17a   :  { %v342_v36 = vmax.f32 %v341_v35, 0.0 }
 0x17c   :  { %v343_v38 = vadd.f32 1e-05, %v342_v36 }
 0x17e   :  { %469 = vrsqrt.f32 %v343_v38 }
 0x188   :  { %v470_v44 = vpop.eup %469 }
 0x189   :  { %v346_v45 = vmul.f32 %v470_v44, %v345_v41 }
 0x18b   :  { %v348_v47 = vmul.f32 %v346_v45, %v338_v31  ;;  %v353_v48 = vrot.slane %v346_v45, %v352_v43 }
 0x18d   :  { %v349_v49 = vsub.f32 %v347_v46, %v348_v47  ;;  %v377_v50 = vmul.f32 %v353_v48, %v595_v42  ;;  %v354_v51 = vmul.f32 %v353_v48, %v562_v21  ;;  %v355_v52 = vmul.f32 %v353_v48, %v570_v25 }
 0x18e   :  { %v356_v53 = vmul.f32 %v560_v20, %v353_v48  ;;  %v357_v54 = vmul.f32 %v566_v23, %v353_v48  ;;  %v376_v55 = vmul.f32 %v353_v48, %v582_v32  ;;  %v378_v56 = vmul.f32 %v578_v29, %v353_v48 }
 0x18f   :  { %v362_v57 = vrot.slane %v349_v49, %v352_v43  ;;  %v379_v58 = vmul.f32 %v590_v37, %v353_v48 }
 0x191   :  { %v381_v59 = vadd.f32 %v377_v50, %v362_v57  ;;  %v364_v60 = vadd.f32 %v362_v57, %v354_v51  ;;  %v365_v61 = vadd.f32 %v362_v57, %v355_v52  ;;  %v366_v62 = vadd.f32 %v362_v57, %v356_v53 }
 0x192   :  { %v367_v21 = vadd.f32 %v362_v57, %v357_v54  ;;  %v380_v42 = vadd.f32 %v376_v55, %v362_v57  ;;  %v382_v25 = vadd.f32 %v378_v56, %v362_v57  ;;  %v383_v63 = vadd.f32 %v379_v58, %v362_v57 }
 0x193   :  { %v385_v20 = vmax.f32 %v381_v59, 0.0  ;;  %v368_v0 = vmax.f32 %v364_v60, 0.0  ;;  %v369_v23 = vmax.f32 %v365_v61, 0.0  ;;  %v370_v1 = vmax.f32 %v366_v62, 0.0 }
 0x194   :  { %v371_v32 = vmax.f32 %v367_v21, 0.0  ;;  %v384_v2 = vmax.f32 %v380_v42, 0.0  ;;  %v386_v29 = vmax.f32 %v382_v25, 0.0  ;;  %v387_v3 = vmax.f32 %v383_v63, 0.0 }
 0x195   :  { %390 = vst.msk [vmem:[#allocation2 + $0x28] sm:$0xff] %vm155_vm2, %v385_v20  ;;  %372 = vst.msk [vmem:[#allocation2] sm:$0xff] %vm155_vm2, %v368_v0 }
 0x196   :  { %373 = vst.msk [vmem:[#allocation2 + $0x8] sm:$0xff] %vm155_vm2, %v369_v23  ;;  %374 = vst.msk [vmem:[#allocation2 + $0x10] sm:$0xff] %vm155_vm2, %v370_v1 }
 0x197   :  { %375 = vst.msk [vmem:[#allocation2 + $0x18] sm:$0xff] %vm155_vm2, %v371_v32  ;;  %389 = vst.msk [vmem:[#allocation2 + $0x20] sm:$0xff] %vm155_vm2, %v384_v2 }
 0x198   :  { %391 = vst.msk [vmem:[#allocation2 + $0x30] sm:$0xff] %vm155_vm2, %v386_v29  ;;  %392 = vst.msk [vmem:[#allocation2 + $0x38] sm:$0xff] %vm155_vm2, %v387_v3 }
 0x199   :  { %482 = shalt.err (!%p479_p4)
}
 0x19a   :  { %s483_s15 = scalar_lea.hbm %s654_s4, 1024 }
 0x19b   :  { %p484_p5 = scmp.ne.s32.totalorder %s654_s4, %s483_s15  ;;  %p487_p6 = scmp.lt.u32.totalorder %s483_s15, %s654_s4 }
 0x19d   :  { %p489_p7 = pnand %p487_p6, %p484_p5 }
 0x19f   :  { %492 = shalt.err (!%p489_p7)
}
 0x1a0   :  { %s497_s20 = smov 128   ;;  %s498_s21 = smov 8  }
 0x1a1   :  { %404 = dma.vmem_to_hbm [thread:$0]  %s399_s3, 1024, %s654_s4, [#allocation3], %s497_s20, %s497_s20, %s498_s21  }
 0x1a2   :  { %493 = dma.done.wait [#allocation3], 1024  }
 0x1a3   :  { %494 = vsyncadd [#allocation3], 4294966272 }
 0x1a4   :  { %408 = vsyncpa [#allocation3], 1 }

</bundles_post_ra>
